<compile_context>
chip_gen: v6e
topology: v6e:2x2x1
jax: 0.10.0
libtpu: 0.0.40
codegen_flags: <defaults>
</compile_context>

<pallas_src>
import jax
import jax.numpy as jnp
from jax import lax
from jax.experimental import pallas as pl
from jax.experimental.pallas import tpu as pltpu

N_BITS = 8
N_LEVELS = 2 ** N_BITS


def _round_up(x, m):
    return ((x + m - 1) // m) * m


def _fake_quant_rows(w_f32):
    """Asymmetric affine fake-quant per row (output channel); range clipped to contain 0."""
    w_min = jnp.minimum(jnp.min(w_f32, axis=1, keepdims=True), 0.0)
    w_max = jnp.maximum(jnp.max(w_f32, axis=1, keepdims=True), 0.0)
    delta = jnp.maximum((w_max - w_min) / (N_LEVELS - 1), 1e-8)
    zero_point = jnp.round(-w_min / delta)
    w_int = jnp.clip(jnp.round(w_f32 / delta) + zero_point, 0.0, float(N_LEVELS - 1))
    return (w_int - zero_point) * delta


# ----------------------------------------------------------------------------
# Kernel 1 (two-pass path): per-output-channel fake-quantization, run once.
# ----------------------------------------------------------------------------
def quantize_weight_kernel(w_ref, wq_ref):
    # w_ref: (tn_q, K) original dtype -> wq_ref: (tn_q, K) bf16 dequantized levels
    w = w_ref[...].astype(jnp.float32)
    wq_ref[...] = _fake_quant_rows(w).astype(wq_ref.dtype)


# ----------------------------------------------------------------------------
# Kernel 2 (two-pass path): tiled y = x @ w.T + b with f32 accumulator over K.
# ----------------------------------------------------------------------------
def linear_kernel(x_ref, w_ref, b_ref, o_ref, acc_ref):
    # x_ref: (tm, tk) bf16, w_ref: (tn, tk) bf16, b_ref: (1, tn) f32, o_ref: (tm, tn)
    k = pl.program_id(2)

    @pl.when(k == 0)
    def _():
        acc_ref[...] = jnp.zeros_like(acc_ref)

    acc_ref[...] += lax.dot_general(
        x_ref[...], w_ref[...],
        dimension_numbers=(((1,), (1,)), ((), ())),   # contract K with K, no w.T
        preferred_element_type=jnp.float32)

    @pl.when(k == pl.num_programs(2) - 1)
    def _():
        o_ref[...] = (acc_ref[...] + b_ref[...]).astype(o_ref.dtype)


# ----------------------------------------------------------------------------
# Kernel 3 (small-M fused path): quantize the weight tile (visited once) + matmul.
# ----------------------------------------------------------------------------
def fused_quant_linear_kernel(x_ref, w_ref, b_ref, o_ref):
    # x_ref: (M_pad, K) bf16, w_ref: (tn, K) original dtype, b_ref: (1, tn) f32
    w = w_ref[...].astype(jnp.float32)
    w_q = _fake_quant_rows(w).astype(jnp.bfloat16)
    y = lax.dot_general(
        x_ref[...], w_q,
        dimension_numbers=(((1,), (1,)), ((), ())),
        preferred_element_type=jnp.float32)
    o_ref[...] = (y + b_ref[...]).astype(o_ref.dtype)


@jax.jit
def _int_linear_2d(x2d, weight, bias):
    M, K = x2d.shape
    N = weight.shape[0]
    out_dtype = x2d.dtype
    w_item = jnp.dtype(weight.dtype).itemsize

    # ---- M tiling: multiple of 16 (bf16 packed sublanes), up to 512 ----------
    tm = min(512, _round_up(M, 16))
    M_pad = _round_up(M, tm)
    m_blocks = M_pad // tm

    # ---- N tiling: lane-dense tiles --------------------------------------------
    tn = 128 if N <= 128 else 256

    # ---- K tiling: keep full K resident (x tile reused across the N sweep) unless
    #      the double-buffered bf16 tiles would exceed the VMEM budget ------------
    full_k_cost = 2 * (tm * K + tn * K) * 2            # x + w, bf16, double-buffered
    if full_k_cost <= (32 << 20):
        tk = K
    else:
        tk = K
        for cand in (2048, 1024, 512, 256, 128):
            if K % cand == 0:
                tk = cand
                break

    # ---- fused fast path for decode-style small M -------------------------------
    fused_bytes = 2 * (M_pad * K * 2 + tn * K * w_item + M_pad * tn * 4)
    fused = (m_blocks == 1) and (tk == K) and (fused_bytes <= (32 << 20))
    if fused and N > 128:
        tn = 128          # >=2 N tiles so both v7x TensorCores get work
    N_pad = _round_up(N, tn)

    # ---- pad in original dtypes only where required -----------------------------
    if N_pad != N:
        weight = jnp.pad(weight, ((0, N_pad - N), (0, 0)))
    b = jnp.pad(bias.astype(jnp.float32), (0, N_pad - N)).reshape(1, N_pad)
    if M_pad != M:
        x2d = jnp.pad(x2d, ((0, M_pad - M), (0, 0)))
    x_in = x2d.astype(jnp.bfloat16)

    if fused:
        out = pl.pallas_call(
            fused_quant_linear_kernel,
            out_shape=jax.ShapeDtypeStruct((M_pad, N_pad), out_dtype),
            grid=(N_pad // tn,),
            in_specs=[
                pl.BlockSpec((M_pad, K), lambda j: (0, 0)),   # x, resident
                pl.BlockSpec((tn, K), lambda j: (j, 0)),      # weight tile (orig dtype)
                pl.BlockSpec((1, tn), lambda j: (0, j)),      # bias tile
            ],
            out_specs=pl.BlockSpec((M_pad, tn), lambda j: (0, j)),
            compiler_params=pltpu.CompilerParams(
                dimension_semantics=("parallel",),
                vmem_limit_bytes=48 << 20),
        )(x_in, weight, b)
        return out[:M, :N]

    # ---- pass 1: fake-quantize the weight ONCE (hoisted out of the M loop) -------
    tn_q = 128
    while tn_q > 8 and 2 * tn_q * K * (w_item + 2) > (40 << 20):
        tn_q //= 2      # shrink row block so large-K weights fit v5e/v6e/v7x VMEM
    w_q = pl.pallas_call(
        quantize_weight_kernel,
        out_shape=jax.ShapeDtypeStruct((N_pad, K), jnp.bfloat16),
        grid=(N_pad // tn_q,),
        in_specs=[pl.BlockSpec((tn_q, K), lambda j: (j, 0))],
        out_specs=pl.BlockSpec((tn_q, K), lambda j: (j, 0)),
        compiler_params=pltpu.CompilerParams(
            dimension_semantics=("parallel",),
            vmem_limit_bytes=48 << 20),
    )(weight)

    # ---- pass 2: tiled matmul + bias ---------------------------------------------
    k_blocks = K // tk
    out = pl.pallas_call(
        linear_kernel,
        out_shape=jax.ShapeDtypeStruct((M_pad, N_pad), out_dtype),
        grid=(m_blocks, N_pad // tn, k_blocks),
        in_specs=[
            pl.BlockSpec((tm, tk), lambda i, j, k: (i, k)),   # x tile
            pl.BlockSpec((tn, tk), lambda i, j, k: (j, k)),   # quantized weight tile
            pl.BlockSpec((1, tn), lambda i, j, k: (0, j)),    # bias tile
        ],
        out_specs=pl.BlockSpec((tm, tn), lambda i, j, k: (i, j)),
        scratch_shapes=[pltpu.VMEM((tm, tn), jnp.float32)],
        compiler_params=pltpu.CompilerParams(
            dimension_semantics=("parallel", "parallel", "arbitrary"),
            vmem_limit_bytes=48 << 20),                        # fits v7x's 64 MiB VMEM
    )(x_in, w_q, b)
    return out[:M, :N]


def int_linear(x, weight, bias=None):
    """x: (..., K), weight: (N, K), bias: (N,) or None -> (..., N)."""
    orig_shape = x.shape
    K = orig_shape[-1]
    N = weight.shape[0]
    if bias is None:
        bias = jnp.zeros((N,), dtype=jnp.float32)
    x2d = x.reshape(-1, K)
    out = _int_linear_2d(x2d, weight, bias)
    return out.reshape(*orig_shape[:-1], N)


def int_linear_reference(x, weight, bias):
    """Pure-JAX reference matching the kernel semantics (bf16 MXU matmul, f32 accum)."""
    w = weight.astype(jnp.float32)
    w_q = _fake_quant_rows(w)
    y = jnp.dot(x.astype(jnp.bfloat16), w_q.astype(jnp.bfloat16).T,
                preferred_element_type=jnp.float32)
    return y + bias


if __name__ == "__main__":
    key = jax.random.PRNGKey(0)
    k_x, k_w, k_b, k_x2, k_w2, k_b2 = jax.random.split(key, 6)

    # Case 1 (fused small-M path): hidden=32 -> out=32 on (batch=2, seq=8) tokens.
    in_features, out_features = 32, 32
    x = jax.random.normal(k_x, (2, 8, in_features), dtype=jnp.float32)
    w = jax.random.normal(k_w, (out_features, in_features), dtype=jnp.float32) * 0.1
    b = jax.random.normal(k_b, (out_features,), dtype=jnp.float32) * 0.01

    y = jax.block_until_ready(int_linear(x, w, b))
    y_ref = int_linear_reference(x, w, b)
    assert y.shape == (2, 8, out_features)
    assert jnp.allclose(y, y_ref, atol=2e-3, rtol=2e-3), (
        float(jnp.max(jnp.abs(y - y_ref))))

    # Case 2 (two-pass path: separate quant kernel + accumulator matmul, M/N padding).
    in2, out2 = 64, 96
    x2 = jax.random.normal(k_x2, (4, 160, in2), dtype=jnp.float32)
    w2 = jax.random.normal(k_w2, (out2, in2), dtype=jnp.float32) * 0.1
    b2 = jax.random.normal(k_b2, (out2,), dtype=jnp.float32) * 0.01

    y2 = jax.block_until_ready(int_linear(x2, w2, b2))
    y2_ref = int_linear_reference(x2, w2, b2)
    assert y2.shape == (4, 160, out2)
    assert jnp.allclose(y2, y2_ref, atol=2e-3, rtol=2e-3), (
        float(jnp.max(jnp.abs(y2 - y2_ref))))

    print("KERNEL_OK")
</pallas_src>

<mosaic_0001>
module attributes {stable_mosaic.version = 11 : i64} {
  func.func @fused_quant_linear_kernel(%arg0: i32, %arg1: memref<16x32xbf16, #tpu.memory_space<vmem>>, %arg2: memref<128x32xf32, #tpu.memory_space<vmem>>, %arg3: memref<1x128xf32, #tpu.memory_space<vmem>>, %arg4: memref<16x128xf32, #tpu.memory_space<vmem>>) attributes {dimension_semantics = [#tpu.dimension_semantics<parallel>], iteration_bounds = array<i64: 1>, scalar_prefetch = 0 : i64, scratch_operands = 0 : i64, tpu.core_type = #tpu.core_type<tc>, window_params = [{pipeline_mode = #tpu.pipeline_mode<synchronous>, transform_indices = @transform_0, window_bounds = array<i64: 16, 32>}, {transform_indices = @transform_1, window_bounds = array<i64: 128, 32>}, {transform_indices = @transform_2, window_bounds = array<i64: 1, 128>}, {transform_indices = @transform_3, window_bounds = array<i64: 16, 128>}]} {
    %c0 = arith.constant 0 : index
    %c0_0 = arith.constant 0 : index
    %0 = vector.load %arg2[%c0, %c0_0] : memref<128x32xf32, #tpu.memory_space<vmem>>, vector<128x32xf32>
    %cst = arith.constant dense<0x7F800000> : vector<128xf32>
    %1 = vector.multi_reduction <minimumf>, %0, %cst [1] : vector<128x32xf32> to vector<128xf32>
    %2 = vector.shape_cast %1 : vector<128xf32> to vector<128x1xf32>
    %cst_1 = arith.constant 0.000000e+00 : f32
    %3 = vector.broadcast %cst_1 : f32 to vector<128x1xf32>
    %4 = arith.minimumf %2, %3 : vector<128x1xf32>
    %cst_2 = arith.constant dense<0xFF800000> : vector<128xf32>
    %5 = vector.multi_reduction <maximumf>, %0, %cst_2 [1] : vector<128x32xf32> to vector<128xf32>
    %6 = vector.shape_cast %5 : vector<128xf32> to vector<128x1xf32>
    %cst_3 = arith.constant 0.000000e+00 : f32
    %7 = vector.broadcast %cst_3 : f32 to vector<128x1xf32>
    %8 = arith.maximumf %6, %7 : vector<128x1xf32>
    %9 = arith.subf %8, %4 : vector<128x1xf32>
    %cst_4 = arith.constant 2.550000e+02 : f32
    %10 = vector.broadcast %cst_4 : f32 to vector<128x1xf32>
    %11 = arith.divf %9, %10 : vector<128x1xf32>
    %cst_5 = arith.constant 9.99999993E-9 : f32
    %12 = vector.broadcast %cst_5 : f32 to vector<128x1xf32>
    %13 = arith.maximumf %11, %12 : vector<128x1xf32>
    %cst_6 = arith.constant 0.000000e+00 : f32
    %14 = vector.broadcast %cst_6 : f32 to vector<128x1xf32>
    %15 = arith.subf %14, %4 : vector<128x1xf32>
    %16 = arith.divf %15, %13 : vector<128x1xf32>
    %17 = math.roundeven %16 : vector<128x1xf32>
    %18 = vector.broadcast %13 : vector<128x1xf32> to vector<128x32xf32>
    %19 = arith.divf %0, %18 : vector<128x32xf32>
    %20 = math.roundeven %19 : vector<128x32xf32>
    %21 = vector.broadcast %17 : vector<128x1xf32> to vector<128x32xf32>
    %22 = arith.addf %20, %21 : vector<128x32xf32>
    %cst_7 = arith.constant 0.000000e+00 : f32
    %cst_8 = arith.constant 2.550000e+02 : f32
    %23 = vector.broadcast %cst_7 : f32 to vector<128x32xf32>
    %24 = arith.maximumf %23, %22 : vector<128x32xf32>
    %25 = vector.broadcast %cst_8 : f32 to vector<128x32xf32>
    %26 = arith.minimumf %25, %24 : vector<128x32xf32>
    %27 = vector.broadcast %17 : vector<128x1xf32> to vector<128x32xf32>
    %28 = arith.subf %26, %27 : vector<128x32xf32>
    %29 = vector.broadcast %13 : vector<128x1xf32> to vector<128x32xf32>
    %30 = arith.mulf %28, %29 : vector<128x32xf32>
    %31 = arith.truncf %30 : vector<128x32xf32> to vector<128x32xbf16>
    %c0_9 = arith.constant 0 : index
    %c0_10 = arith.constant 0 : index
    %32 = vector.load %arg1[%c0_9, %c0_10] : memref<16x32xbf16, #tpu.memory_space<vmem>>, vector<16x32xbf16>
    %cst_11 = arith.constant dense<0.000000e+00> : vector<16x128xf32>
    %33 = tpu.matmul %32, %31, %cst_11 {dimension_numbers = #tpu.dot_dimension_numbers<[1], [1], [0], [0], [0, 0, 1, 0], [], []>} : vector<16x32xbf16>, vector<128x32xbf16>, vector<16x128xf32> -> vector<16x128xf32>
    %c0_12 = arith.constant 0 : index
    %c0_13 = arith.constant 0 : index
    %34 = vector.load %arg3[%c0_12, %c0_13] : memref<1x128xf32, #tpu.memory_space<vmem>>, vector<1x128xf32>
    %35 = vector.broadcast %34 : vector<1x128xf32> to vector<16x128xf32>
    %36 = arith.addf %33, %35 : vector<16x128xf32>
    %c0_14 = arith.constant 0 : index
    %c0_15 = arith.constant 0 : index
    %37 = vector.load %arg4[%c0_14, %c0_15] : memref<16x128xf32, #tpu.memory_space<vmem>>, vector<16x128xf32>
    tpu.vector_store %arg4[%c0_14, %c0_15], %36 {strides = array<i32>} : memref<16x128xf32, #tpu.memory_space<vmem>>, vector<16x128xf32>,
    return
  }
  func.func @transform_0(%arg0: i32) -> (i32, i32) {
    %c0_i32 = arith.constant 0 : i32
    %c0_i32_0 = arith.constant 0 : i32
    %c0_i32_1 = arith.constant 0 : i32
    return %c0_i32, %c0_i32_0 : i32, i32
  }
  func.func @transform_1(%arg0: i32) -> (i32, i32) {
    %c0_i32 = arith.constant 0 : i32
    %c0_i32_0 = arith.constant 0 : i32
    return %arg0, %c0_i32 : i32, i32
  }
  func.func @transform_2(%arg0: i32) -> (i32, i32) {
    %c0_i32 = arith.constant 0 : i32
    %c0_i32_0 = arith.constant 0 : i32
    return %c0_i32, %arg0 : i32, i32
  }
  func.func @transform_3(%arg0: i32) -> (i32, i32) {
    %c0_i32 = arith.constant 0 : i32
    %c0_i32_0 = arith.constant 0 : i32
    return %c0_i32, %arg0 : i32, i32
  }
}

</mosaic_0001>

<bundles_post_ra>
// kernel: _int_linear_2d.1
= control target key start
LH: loop header
LB: loop body
LE: loop exit
PB: predicated region body
PF: predicated region fallthrough
CT: control target
= control target key end

     0   :  { %vm32_vm0 = vcmask 261120   ;;  %s1586_s0 = inlined_call_operand.vmem [shape: bf16[16,32], index: 0, kind: input, shape index: {}]   ;;  %s1587_s1 = inlined_call_operand.vmem [shape: f32[128,32], index: 1, kind: input, shape index: {}]   ;;  %s1588_s2 = inlined_call_operand.vmem [shape: f32[1,128], index: 2, kind: input, shape index: {}]   ;;  %s1589_s3 = inlined_call_operand.hbm [shape: f32[16,128], index: 3, kind: output, shape index: {}]  }
   0x1   :  { %v870_v0 = vld [vmem:[%s1587_s1 + $0x70] sm:$0xff]  ;;  %v875_v1 = vld [vmem:[%s1587_s1 + $0x78] sm:$0xff]  ;;  %v888_v6 = vld [vmem:[%s1587_s1 + $0x68] sm:$0xff] }
   0x2   :  { %v139_v2 = vsel %vm32_vm0, %v870_v0, -inf  ;;  %v75_v3 = vsel %vm32_vm0, %v870_v0, inf  ;;  %v142_v4 = vsel %vm32_vm0, %v875_v1, -inf  ;;  %v78_v5 = vsel %vm32_vm0, %v875_v1, inf  ;;  %v893_v7 = vld [vmem:[%s1587_s1 + $0x60] sm:$0xff] }
   0x3   :  { %140 = vmax.xlane.f32.xlu1 %v139_v2  ;;  %76 = vmin.xlane.f32.xlu0 %v75_v3  ;;  %v72_v8 = vsel %vm32_vm0, %v888_v6, inf  ;;  %v69_v9 = vsel %vm32_vm0, %v893_v7, inf }
   0x7   :  { %143 = vmax.xlane.f32.xlu1 %v142_v4  ;;  %79 = vmin.xlane.f32.xlu0 %v78_v5 }
   0x8   :  { %8 = vsyncpa [#allocation3], 0  ;;  %v136_v10 = vsel %vm32_vm0, %v888_v6, -inf  ;;  %v133_v11 = vsel %vm32_vm0, %v893_v7, -inf  ;;  %v906_v12 = vld [vmem:[%s1587_s1 + $0x58] sm:$0xff]  ;;  %v911_v13 = vld [vmem:[%s1587_s1 + $0x50] sm:$0xff] }
   0x9   :  { %v66_v14 = vsel %vm32_vm0, %v906_v12, inf  ;;  %v63_v15 = vsel %vm32_vm0, %v911_v13, inf  ;;  %v130_v16 = vsel %vm32_vm0, %v906_v12, -inf  ;;  %v127_v17 = vsel %vm32_vm0, %v911_v13, -inf  ;;  %v924_v18 = vld [vmem:[%s1587_s1 + $0x48] sm:$0xff]  ;;  %v929_v19 = vld [vmem:[%s1587_s1 + $0x40] sm:$0xff] }
   0xa   :  { %v60_v20 = vsel %vm32_vm0, %v924_v18, inf  ;;  %v57_v21 = vsel %vm32_vm0, %v929_v19, inf  ;;  %v124_v22 = vsel %vm32_vm0, %v924_v18, -inf  ;;  %v121_v23 = vsel %vm32_vm0, %v929_v19, -inf  ;;  %v942_v24 = vld [vmem:[%s1587_s1 + $0x38] sm:$0xff]  ;;  %v947_v25 = vld [vmem:[%s1587_s1 + $0x30] sm:$0xff] }
   0xb   :  { %73 = vmin.xlane.f32.xlu1 %v72_v8  ;;  %70 = vmin.xlane.f32.xlu0 %v69_v9  ;;  %v54_v26 = vsel %vm32_vm0, %v942_v24, inf  ;;  %v51_v27 = vsel %vm32_vm0, %v947_v25, inf  ;;  %v118_v28 = vsel %vm32_vm0, %v942_v24, -inf  ;;  %v115_v29 = vsel %vm32_vm0, %v947_v25, -inf  ;;  %v960_v30 = vld [vmem:[%s1587_s1 + $0x28] sm:$0xff]  ;;  %v965_v31 = vld [vmem:[%s1587_s1 + $0x20] sm:$0xff] }
   0xc   :  { %v48_v32 = vsel %vm32_vm0, %v960_v30, inf  ;;  %v45_v33 = vsel %vm32_vm0, %v965_v31, inf  ;;  %v112_v34 = vsel %vm32_vm0, %v960_v30, -inf  ;;  %v109_v35 = vsel %vm32_vm0, %v965_v31, -inf  ;;  %v978_v36 = vld [vmem:[%s1587_s1 + $0x18] sm:$0xff]  ;;  %v983_v37 = vld [vmem:[%s1587_s1 + $0x10] sm:$0xff] }
   0xd   :  { %v42_v38 = vsel %vm32_vm0, %v978_v36, inf  ;;  %v39_v39 = vsel %vm32_vm0, %v983_v37, inf  ;;  %v106_v40 = vsel %vm32_vm0, %v978_v36, -inf  ;;  %v103_v41 = vsel %vm32_vm0, %v983_v37, -inf  ;;  %v996_v42 = vld [vmem:[%s1587_s1 + $0x8] sm:$0xff]  ;;  %v1001_v43 = vld [vmem:[%s1587_s1] sm:$0xff] }
   0xe   :  { %v36_v44 = vsel %vm32_vm0, %v996_v42, inf  ;;  %v33_v45 = vsel %vm32_vm0, %v1001_v43, inf  ;;  %v100_v46 = vsel %vm32_vm0, %v996_v42, -inf  ;;  %v97_v47 = vsel %vm32_vm0, %v1001_v43, -inf  ;;  %s844_s20 = smov [#allocation2]  }
   0xf   :  { %137 = vmax.xlane.f32.xlu1 %v136_v10  ;;  %134 = vmax.xlane.f32.xlu0 %v133_v11  ;;  %v1591_v48 = vmov 0.0   ;;  %s483_s21 = sshll.u32 %s844_s20, 4  ;;  %s484_s21 = int_to_ptr.vmem [resolvable:$true] %s483_s21 }
  0x10   :  { %506 = vmatprep.subr.bf16.mxu0 %v1591_v48  ;;  %s820_s22 = scalar_lea.vmem %s484_s21, 256  ;;  %p825_p1 = scmp.lt.s32.totalorder %s484_s21, %s484_s21 }
  0x11   :  { %p821_p0 = scmp.ne.s32.totalorder %s484_s21, %s820_s22  ;;  %p826_p2 = scmp.lt.s32.totalorder %s820_s22, %s820_s22 }
  0x13   :  { %67 = vmin.xlane.f32.xlu1 %v66_v14  ;;  %64 = vmin.xlane.f32.xlu0 %v63_v15  ;;  %p827_p3 = por %p826_p2, %p825_p1 }
  0x15   :  { %p828_p4 = pnand %p827_p3, %p821_p0 }
  0x17   :  { %131 = vmax.xlane.f32.xlu1 %v130_v16  ;;  %128 = vmax.xlane.f32.xlu0 %v127_v17 }
  0x1b   :  { %61 = vmin.xlane.f32.xlu1 %v60_v20  ;;  %58 = vmin.xlane.f32.xlu0 %v57_v21 }
  0x1f   :  { %125 = vmax.xlane.f32.xlu1 %v124_v22  ;;  %122 = vmax.xlane.f32.xlu0 %v121_v23 }
  0x23   :  { %55 = vmin.xlane.f32.xlu1 %v54_v26  ;;  %52 = vmin.xlane.f32.xlu0 %v51_v27 }
  0x27   :  { %119 = vmax.xlane.f32.xlu1 %v118_v28  ;;  %116 = vmax.xlane.f32.xlu0 %v115_v29 }
  0x2b   :  { %49 = vmin.xlane.f32.xlu1 %v48_v32  ;;  %46 = vmin.xlane.f32.xlu0 %v45_v33 }
  0x2f   :  { %113 = vmax.xlane.f32.xlu1 %v112_v34  ;;  %110 = vmax.xlane.f32.xlu0 %v109_v35 }
  0x33   :  { %43 = vmin.xlane.f32.xlu1 %v42_v38  ;;  %40 = vmin.xlane.f32.xlu0 %v39_v39 }
  0x37   :  { %107 = vmax.xlane.f32.xlu1 %v106_v40  ;;  %104 = vmax.xlane.f32.xlu0 %v103_v41 }
  0x3b   :  { %37 = vmin.xlane.f32.xlu1 %v36_v44  ;;  %34 = vmin.xlane.f32.xlu0 %v33_v45 }
  0x3f   :  { %101 = vmax.xlane.f32.xlu1 %v100_v46  ;;  %98 = vmax.xlane.f32.xlu0 %v97_v47 }
  0x8c   :  { %v141_v49 = vpop.xlane.xlu1 %140  ;;  %v77_v50 = vpop.xlane.xlu0 %76 }
  0x8d   :  { %v159_v51 = vmax.f32 %v141_v49, 0.0  ;;  %v95_v52 = vmin.f32 %v77_v50, 0.0 }
  0x8f   :  { %v175_v53 = vsub.f32 %v159_v51, %v95_v52  ;;  %v224_v49 = vsub.f32 0.0, %v95_v52 }
  0x90   :  { %v144_v54 = vpop.xlane.xlu1 %143  ;;  %v1012_v55 = vpop.xlane.xlu0 %79 }
  0x91   :  { %v1014_v56 = vmul.f32 0.003921569, %v175_v53  ;;  %v160_v57 = vmax.f32 %v144_v54, 0.0  ;;  %v96_v58 = vmin.f32 %v1012_v55, 0.0 }
  0x93   :  { %v1594_v61 = vmax.f32 %v1014_v56, 1e-08  ;;  %v176_v62 = vsub.f32 %v160_v57, %v96_v58 }
  0x94   :  { %v74_v59 = vpop.xlane.xlu1 %73  ;;  %v71_v60 = vpop.xlane.xlu0 %70 }
  0x95   :  { %v94_v3 = vmin.f32 %v74_v59, 0.0  ;;  %v93_v4 = vmin.f32 %v71_v60, 0.0  ;;  %788 = vrcp.f32 %v1594_v61  ;;  %v1022_v11 = vmul.f32 0.003921569, %v176_v62 }
  0x97   :  { %v1593_v22 = vmax.f32 %v1022_v11, 1e-08  ;;  %v223_v62 = vsub.f32 0.0, %v94_v3 }
  0x98   :  { %v138_v63 = vpop.xlane.xlu1 %137  ;;  %v135_v2 = vpop.xlane.xlu0 %134 }
  0x99   :  { %v158_v5 = vmax.f32 %v138_v63, 0.0  ;;  %v157_v8 = vmax.f32 %v135_v2, 0.0  ;;  %v222_v2 = vsub.f32 0.0, %v93_v4 }
  0x9b   :  { %v174_v9 = vsub.f32 %v158_v5, %v94_v3  ;;  %v173_v10 = vsub.f32 %v157_v8, %v93_v4 }
  0x9c   :  { %v68_v14 = vpop.xlane.xlu1 %67  ;;  %v65_v15 = vpop.xlane.xlu0 %64 }
  0x9d   :  { %v1024_v16 = vmul.f32 0.003921569, %v174_v9  ;;  %v1026_v17 = vmul.f32 0.003921569, %v173_v10  ;;  %v92_v23 = vmin.f32 %v68_v14, 0.0  ;;  %v91_v28 = vmin.f32 %v65_v15, 0.0 }
  0x9f   :  { %v1599_v20 = vmax.f32 %v1024_v16, 1e-08  ;;  %v1598_v21 = vmax.f32 %v1026_v17, 1e-08 }
  0xa0   :  { %v132_v26 = vpop.xlane.xlu1 %131  ;;  %v129_v27 = vpop.xlane.xlu0 %128 }
  0xa1   :  { %790 = vrcp.f32 %v1599_v20  ;;  %v156_v29 = vmax.f32 %v132_v26, 0.0  ;;  %v155_v32 = vmax.f32 %v129_v27, 0.0 }
  0xa2   :  { %792 = vrcp.f32 %v1598_v21  ;;  %v789_v47 = vpop.eup %788 }
  0xa3   :  { %v172_v33 = vsub.f32 %v156_v29, %v92_v23  ;;  %v171_v34 = vsub.f32 %v155_v32, %v91_v28  ;;  %794 = vrcp.f32 %v1593_v22  ;;  %v1047_v57 = vmul.f32 %v789_v47, %v224_v49 }
  0xa4   :  { %v62_v35 = vpop.xlane.xlu1 %61  ;;  %v59_v38 = vpop.xlane.xlu0 %58  ;;  %v225_v29 = vsub.f32 0.0, %v96_v58 }
  0xa5   :  { %v1037_v39 = vmul.f32 0.003921569, %v172_v33  ;;  %v1039_v40 = vmul.f32 0.003921569, %v171_v34  ;;  %v90_v50 = vmin.f32 %v62_v35, 0.0  ;;  %v89_v51 = vmin.f32 %v59_v38, 0.0 }
  0xa6   :  { %v640_v14 = vcvt.f32.s32 %v1047_v57  ;;  %v1071_v33 = vmul.f32 %v789_v47, %v870_v0  ;;  %v221_v35 = vsub.f32 0.0, %v92_v23 }
  0xa7   :  { %v1597_v41 = vmax.f32 %v1037_v39, 1e-08  ;;  %v1596_v44 = vmax.f32 %v1039_v40, 1e-08  ;;  %v219_v0 = vsub.f32 0.0, %v90_v50 }
  0xa8   :  { %v126_v45 = vpop.xlane.xlu1 %125  ;;  %v123_v46 = vpop.xlane.xlu0 %122  ;;  %v1074_v38 = vcvt.s32.f32 %v640_v14 }
  0xa9   :  { %796 = vrcp.f32 %v1597_v41  ;;  %v154_v53 = vmax.f32 %v126_v45, 0.0  ;;  %v153_v54 = vmax.f32 %v123_v46, 0.0  ;;  %v220_v46 = vsub.f32 0.0, %v91_v28 }
  0xaa   :  { %798 = vrcp.f32 %v1596_v44  ;;  %v1088_v28 = vsub.f32 0.0, %v89_v51 }
  0xab   :  { %v170_v59 = vsub.f32 %v154_v53, %v90_v50  ;;  %v169_v60 = vsub.f32 %v153_v54, %v89_v51 }
  0xad   :  { %v1049_v5 = vmul.f32 0.003921569, %v170_v59  ;;  %v1051_v52 = vmul.f32 0.003921569, %v169_v60 }
  0xae   :  { %v791_v63 = vpop.eup %790 }
  0xaf   :  { %v793_v8 = vpop.eup %792  ;;  %v1053_v9 = vmul.f32 %v791_v63, %v223_v62  ;;  %v1056_v10 = vmul.f32 %v791_v63, %v888_v6  ;;  %v1595_v4 = vmax.f32 %v1049_v5, 1e-08  ;;  %v1590_v6 = vmax.f32 %v1051_v52, 1e-08 }
  0xb0   :  { %v1059_v15 = vmul.f32 %v793_v8, %v222_v2  ;;  %v795_v26 = vpop.eup %794  ;;  %v1063_v3 = vmul.f32 %v793_v8, %v893_v7  ;;  %v642_v63 = vand.u32 2147483647, %v1074_v38 }
  0xb1   :  { %v632_v27 = vcvt.f32.s32 %v1053_v9  ;;  %v760_v32 = vcvt.f32.s32 %v1056_v10  ;;  %v1077_v45 = vmul.f32 %v795_v26, %v225_v29  ;;  %800 = vrcp.f32 %v1595_v4 }
  0xb2   :  { %v624_v34 = vcvt.f32.s32 %v1059_v15  ;;  %v752_v58 = vcvt.f32.s32 %v1063_v3  ;;  %802 = vrcp.f32 %v1590_v6  ;;  %v1091_v62 = vmul.f32 %v795_v26, %v875_v1  ;;  %v1105_v26 = vpop.xlane.xlu0 %52 }
  0xb3   :  { %v633_v49 = vcvt.s32.f32 %v632_v27  ;;  %v761_v55 = vcvt.s32.f32 %v760_v32  ;;  %v648_v50 = vcvt.f32.s32 %v1077_v45  ;;  %v630_v1 = vand.u32 2147483647, %v1053_v9 }
  0xb4   :  { %v625_v59 = vcvt.s32.f32 %v624_v34  ;;  %v753_v2 = vcvt.s32.f32 %v752_v58  ;;  %v1101_v34 = vpop.xlane.xlu1 %55  ;;  %v627_v51 = vand.u32 2147483648, %v1059_v15  ;;  %v622_v41 = vand.u32 2147483647, %v1059_v15 }
  0xb5   :  { %v634_v14 = vand.u32 2147483647, %v633_v49  ;;  %v762_v27 = vand.u32 2147483647, %v761_v55  ;;  %v758_v49 = vand.u32 2147483647, %v1056_v10 }
  0xb6   :  { %v797_v53 = vpop.eup %796  ;;  %v763_v55 = vand.u32 2147483648, %v1056_v10  ;;  %v755_v21 = vand.u32 2147483648, %v1063_v3  ;;  %vm631_vm1 = vcmp.lt.f32.partialorder %v630_v1, 8388608.0  ;;  %v1129_v20 = vpop.xlane.xlu0 %116  ;;  %vm623_vm3 = vcmp.lt.f32.partialorder %v622_v41, 8388608.0 }
  0xb7   :  { %v799_v54 = vpop.eup %798  ;;  %v1086_v60 = vmul.f32 %v797_v53, %v221_v35  ;;  %v1096_v8 = vmul.f32 %v797_v53, %v906_v12  ;;  %v635_v12 = vand.u32 2147483648, %v1053_v9  ;;  %v754_v53 = vand.u32 2147483647, %v753_v2 }
  0xb8   :  { %v1099_v32 = vmul.f32 %v799_v54, %v220_v46  ;;  %v626_v46 = vand.u32 2147483647, %v625_v59  ;;  %v1114_v22 = vmul.f32 %v799_v54, %v911_v13  ;;  %v764_v4 = vor.u32 %v763_v55, %v762_v27 }
  0xb9   :  { %v616_v29 = vcvt.f32.s32 %v1086_v60  ;;  %v744_v48 = vcvt.f32.s32 %v1096_v8  ;;  %v636_v61 = vor.u32 %v635_v12, %v634_v14  ;;  %v1600_v59 = vmin.f32 %v1101_v34, 0.0  ;;  %v1126_v14 = vpop.xlane.xlu1 %119 }
  0xba   :  { %v608_v44 = vcvt.f32.s32 %v1099_v32  ;;  %vm1121_vm2 = vcmp.lt.f32.partialorder %v758_v49, 8388608.0  ;;  %v628_v13 = vor.u32 %v627_v51, %v626_v46  ;;  %v750_v54 = vand.u32 2147483647, %v1063_v3 }
  0xbb   :  { %v617_v6 = vcvt.s32.f32 %v616_v29  ;;  %v745_v35 = vcvt.s32.f32 %v744_v48  ;;  %v756_v27 = vor.u32 %v755_v21, %v754_v53  ;;  %v736_v55 = vcvt.f32.s32 %v1114_v22 }
  0xbc   :  { %v1132_v48 = vsel %vm631_vm1, %v636_v61, %v1053_v9  ;;  %v765_v1 = vsel %vm1121_vm2, %v764_v4, %v1056_v10  ;;  %v614_v51 = vand.u32 2147483647, %v1086_v60  ;;  %v609_v49 = vcvt.s32.f32 %v608_v44 }
  0xbd   :  { %v618_v29 = vand.u32 2147483647, %v617_v6  ;;  %v746_v12 = vand.u32 2147483647, %v745_v35  ;;  %v619_v47 = vand.u32 2147483648, %v1086_v60  ;;  %v747_v6 = vand.u32 2147483648, %v1096_v8  ;;  %v1161_v23 = vpop.xlane.xlu1 %49 }
  0xbe   :  { %v801_v46 = vpop.eup %800  ;;  %v742_v21 = vand.u32 2147483647, %v1096_v8  ;;  %v737_v35 = vcvt.s32.f32 %v736_v55  ;;  %vm1141_vm4 = vcmp.lt.f32.partialorder %v750_v54, 8388608.0  ;;  %v1151_v44 = vsel %vm623_vm3, %v628_v13, %v1059_v15 }
  0xbf   :  { %v803_v53 = vpop.eup %802  ;;  %v1145_v9 = vmul.f32 %v801_v46, %v219_v0  ;;  %v1148_v10 = vmul.f32 %v801_v46, %v924_v18  ;;  %v757_v4 = vsel %vm1141_vm4, %v756_v27, %v1063_v3  ;;  %v620_v2 = vor.u32 %v619_v47, %v618_v29  ;;  %v1170_v47 = vpop.xlane.xlu0 %46 }
  0xc0   :  { %v748_v55 = vor.u32 %v747_v6, %v746_v12  ;;  %v1157_v41 = vadd.f32 %v765_v1, %v1132_v48  ;;  %v610_v54 = vand.u32 2147483647, %v609_v49  ;;  %v1601_v0 = vmin.f32 %v1105_v26, 0.0 }
  0xc1   :  { %v600_v58 = vcvt.f32.s32 %v1145_v9  ;;  %vm615_vm5 = vcmp.lt.f32.partialorder %v614_v51, 8388608.0  ;;  %vm1163_vm6 = vcmp.lt.f32.partialorder %v742_v21, 8388608.0  ;;  %v738_v15 = vand.u32 2147483647, %v737_v35 }
  0xc2   :  { %v1168_v3 = vmul.f32 %v803_v53, %v1088_v28  ;;  %v1173_v13 = vadd.f32 %v757_v4, %v1151_v44  ;;  %v606_v27 = vand.u32 2147483647, %v1099_v32  ;;  %v611_v29 = vand.u32 2147483648, %v1099_v32 }
  0xc3   :  { %v728_v12 = vcvt.f32.s32 %v1148_v10  ;;  %v1179_v1 = vsel %vm615_vm5, %v620_v2, %v1086_v60  ;;  %v749_v51 = vsel %vm1163_vm6, %v748_v55, %v1096_v8  ;;  %v739_v28 = vand.u32 2147483648, %v1114_v22  ;;  %v114_v55 = vpop.xlane.xlu1 %113 }
  0xc4   :  { %v601_v49 = vcvt.s32.f32 %v600_v58  ;;  %v612_v21 = vor.u32 %v611_v29, %v610_v54  ;;  %v734_v6 = vand.u32 2147483647, %v1114_v22  ;;  %v592_v4 = vcvt.f32.s32 %v1168_v3 }
  0xc5   :  { %v729_v35 = vcvt.s32.f32 %v728_v12  ;;  %v740_v61 = vor.u32 %v739_v28, %v738_v15  ;;  %v1189_v7 = vmul.f32 %v803_v53, %v929_v19  ;;  %v152_v60 = vmax.f32 %v1126_v14, 0.0  ;;  %v111_v12 = vpop.xlane.xlu0 %110 }
  0xc6   :  { %v1193_v2 = vadd.f32 %v749_v51, %v1179_v1  ;;  %vm607_vm7 = vcmp.lt.f32.partialorder %v606_v27, 8388608.0  ;;  %v598_v8 = vand.u32 2147483647, %v1145_v9  ;;  %v726_v58 = vand.u32 2147483647, %v1148_v10 }
  0xc7   :  { %v334_v54 = vmax.f32 %v1173_v13, 0.0  ;;  %v602_v18 = vand.u32 2147483647, %v601_v49  ;;  %v730_v15 = vand.u32 2147483647, %v729_v35  ;;  %v720_v29 = vcvt.f32.s32 %v1189_v7 }
  0xc8   :  { %v1200_v19 = vsel %vm607_vm7, %v612_v21, %v1099_v32  ;;  %vm735_vm8 = vcmp.lt.f32.partialorder %v734_v6, 8388608.0  ;;  %v603_v14 = vand.u32 2147483648, %v1145_v9  ;;  %v593_v53 = vcvt.s32.f32 %v592_v4 }
  0xc9   :  { %v741_v27 = vsel %vm735_vm8, %v740_v61, %v1114_v22  ;;  %v731_v51 = vand.u32 2147483648, %v1148_v10  ;;  %v721_v28 = vcvt.s32.f32 %v720_v29  ;;  %v168_v13 = vsub.f32 %v152_v60, %v1600_v59 }
  0xca   :  { %v333_v49 = vmax.f32 %v1193_v2, 0.0  ;;  %vm1208_vm9 = vcmp.lt.f32.partialorder %v598_v8, 8388608.0  ;;  %vm1212_vm10 = vcmp.lt.f32.partialorder %v726_v58, 8388608.0  ;;  %v151_v21 = vmax.f32 %v1129_v20, 0.0  ;;  %v1224_v58 = vpop.xlane.xlu1 %43 }
  0xcb   :  { %v604_v6 = vor.u32 %v603_v14, %v602_v18  ;;  %v732_v22 = vor.u32 %v731_v51, %v730_v15  ;;  %v590_v61 = vand.u32 2147483647, %v1168_v3  ;;  %v1218_v4 = vmul.f32 0.003921569, %v168_v13  ;;  %v1229_v15 = vpop.xlane.xlu0 %40 }
  0xcc   :  { %v316_v60 = vadd.f32 %v741_v27, %v1200_v19  ;;  %v594_v29 = vand.u32 2147483647, %v593_v53  ;;  %v718_v2 = vand.u32 2147483647, %v1189_v7  ;;  %v167_v8 = vsub.f32 %v151_v21, %v1601_v0 }
  0xcd   :  { %v595_v59 = vand.u32 2147483648, %v1168_v3  ;;  %v722_v46 = vand.u32 2147483647, %v721_v28  ;;  %v1603_v20 = vmax.f32 %v1218_v4, 1e-08  ;;  %v86_v18 = vmin.f32 %v1161_v23, 0.0 }
  0xce   :  { %v1231_v14 = vmul.f32 0.003921569, %v167_v8  ;;  %v85_v53 = vmin.f32 %v1170_v47, 0.0  ;;  %v150_v27 = vmax.f32 %v114_v55, 0.0  ;;  %v149_v51 = vmax.f32 %v111_v12, 0.0 }
  0xcf   :  { %v1237_v13 = vsel %vm1208_vm9, %v604_v6, %v1145_v9  ;;  %v733_v28 = vsel %vm1212_vm10, %v732_v22, %v1148_v10  ;;  %v723_v21 = vand.u32 2147483648, %v1189_v7  ;;  %804 = vrcp.f32 %v1603_v20 }
  0xd0   :  { %v596_v8 = vor.u32 %v595_v59, %v594_v29  ;;  %v1602_v0 = vmax.f32 %v1231_v14, 1e-08  ;;  %v166_v55 = vsub.f32 %v150_v27, %v86_v18  ;;  %v165_v12 = vsub.f32 %v149_v51, %v85_v53 }
  0xd1   :  { %v1252_v9 = vcvt.s32.f32 %v648_v50  ;;  %v332_v35 = vmax.f32 %v316_v60, 0.0  ;;  %v724_v10 = vor.u32 %v723_v21, %v722_v46  ;;  %v1617_v32 = vand.u32 2147483648, %v1047_v57  ;;  %v108_v46 = vpop.xlane.xlu1 %107  ;;  %v105_v21 = vpop.xlane.xlu0 %104 }
  0xd2   :  { %v315_v59 = vadd.f32 %v733_v28, %v1237_v13  ;;  %806 = vrcp.f32 %v1602_v0  ;;  %v1261_v22 = vmul.f32 0.003921569, %v166_v55  ;;  %v1263_v29 = vmul.f32 0.003921569, %v165_v12 }
  0xd3   :  { %v644_v6 = vor.u32 %v1617_v32, %v642_v63  ;;  %v1618_v27 = vand.u32 2147483647, %v1047_v57  ;;  %v1621_v38 = vmax.f32 %v1157_v41, 0.0  ;;  %v350_v63 = vmin.f32 %v334_v54, 255.0 }
  0xd4   :  { %vm591_vm12 = vcmp.lt.f32.partialorder %v590_v61, 8388608.0  ;;  %v1622_v51 = vcvt.f32.s32 %v1071_v33  ;;  %v349_v55 = vmin.f32 %v333_v49, 255.0  ;;  %vm719_vm13 = vcmp.lt.f32.partialorder %v718_v2, 8388608.0 }
  0xd5   :  { %vm1267_vm11 = vcmp.lt.f32.partialorder %v1618_v27, 8388608.0  ;;  %v351_v60 = vmin.f32 %v1621_v38, 255.0  ;;  %v1276_v12 = vsel %vm591_vm12, %v596_v8, %v1168_v3  ;;  %v199_v32 = vmax.f32 %v1261_v22, 1e-08 }
  0xd6   :  { %v769_v28 = vcvt.s32.f32 %v1622_v51  ;;  %v725_v27 = vsel %vm719_vm13, %v724_v10, %v1189_v7  ;;  %v84_v0 = vmin.f32 %v1224_v58, 0.0  ;;  %v776_v41 = vcvt.f32.s32 %v1091_v62 }
  0xd7   :  { %v148_v38 = vmax.f32 %v108_v46, 0.0  ;;  %v348_v54 = vmin.f32 %v332_v35, 255.0  ;;  %v331_v61 = vmax.f32 %v315_v59, 0.0  ;;  %v1606_v20 = vmax.f32 %v1263_v29, 1e-08 }
  0xd8   :  { %v147_v51 = vmax.f32 %v105_v21, 0.0  ;;  %808 = vrcp.f32 %v199_v32  ;;  %v83_v3 = vmin.f32 %v1229_v15, 0.0  ;;  %v770_v49 = vand.u32 2147483647, %v769_v28 }
  0xd9   :  { %v164_v2 = vsub.f32 %v148_v38, %v84_v0  ;;  %v367_v8 = vsub.f32 %v351_v60, %v1132_v48  ;;  %v314_v7 = vadd.f32 %v725_v27, %v1276_v12  ;;  %v1623_v58 = vand.u32 2147483647, %v1071_v33 }
  0xda   :  { %v771_v35 = vand.u32 2147483648, %v1071_v33  ;;  %v650_v59 = vand.u32 2147483647, %v1252_v9  ;;  %v366_v46 = vsub.f32 %v350_v63, %v1151_v44  ;;  %v777_v21 = vcvt.s32.f32 %v776_v41 }
  0xdb   :  { %vm1290_vm14 = vcmp.lt.f32.partialorder %v1623_v58, 8388608.0  ;;  %v163_v15 = vsub.f32 %v147_v51, %v83_v3  ;;  %v365_v28 = vsub.f32 %v349_v55, %v1179_v1  ;;  %v364_v48 = vsub.f32 %v348_v54, %v1200_v19 }
  0xdc   :  { %v347_v60 = vmin.f32 %v331_v61, 255.0  ;;  %810 = vrcp.f32 %v1606_v20  ;;  %v1626_v27 = vmin.f32 %v1101_v34, 0.0  ;;  %v1306_v58 = vsel %vm1267_vm11, %v644_v6, %v1047_v57  ;;  %v805_v63 = vpop.eup %804 }
  0xdd   :  { %v772_v9 = vor.u32 %v771_v35, %v770_v49  ;;  %v1308_v44 = vmul.f32 0.003921569, %v164_v2  ;;  %v1627_v1 = vmax.f32 %v1024_v16, 1e-08  ;;  %v330_v19 = vmax.f32 %v314_v7, 0.0  ;;  %v1328_v49 = vpop.xlane.xlu1 %37 }
  0xde   :  { %v217_v38 = vsub.f32 0.0, %v1626_v27  ;;  %v1628_v41 = vmin.f32 %v1105_v26, 0.0  ;;  %v1629_v61 = vand.u32 2147483647, %v1077_v45  ;;  %v774_v57 = vand.u32 2147483647, %v1091_v62 }
  0xdf   :  { %v383_v55 = vmul.f32 %v367_v8, %v1627_v1  ;;  %v1324_v50 = vmul.f32 %v805_v63, %v942_v24  ;;  %v778_v51 = vand.u32 2147483647, %v777_v21  ;;  %v1326_v16 = vmul.f32 0.003921569, %v163_v15  ;;  %v1341_v24 = vpop.xlane.xlu0 %34  ;;  %v807_v21 = vpop.eup %806 }
  0xe0   :  { %v216_v54 = vsub.f32 0.0, %v1628_v41  ;;  %vm1316_vm15 = vcmp.lt.f32.partialorder %v1629_v61, 8388608.0  ;;  %v1321_v6 = vmul.f32 %v805_v63, %v217_v38  ;;  %v1632_v26 = vmax.f32 %v1026_v17, 1e-08 }
  0xe1   :  { %v1633_v8 = vmax.f32 %v1037_v39, 1e-08  ;;  %v1634_v35 = vmax.f32 %v1039_v40, 1e-08  ;;  %v363_v38 = vsub.f32 %v347_v60, %v1237_v13  ;;  %v773_v17 = vsel %vm1290_vm14, %v772_v9, %v1071_v33 }
  0xe2   :  { %v382_v2 = vmul.f32 %v366_v46, %v1632_v26  ;;  %v584_v15 = vcvt.f32.s32 %v1321_v6  ;;  %v779_v46 = vand.u32 2147483648, %v1091_v62  ;;  %v1605_v39 = vmax.f32 %v1308_v44, 1e-08 }
  0xe3   :  { %v1334_v7 = vmul.f32 %v365_v28, %v1633_v8  ;;  %v1338_v27 = vmul.f32 %v364_v48, %v1634_v35  ;;  %v712_v28 = vcvt.f32.s32 %v1324_v50  ;;  %v1350_v40 = vmul.f32 %v807_v21, %v216_v54 }
  0xe4   :  { %v1353_v48 = vmul.f32 %v807_v21, %v947_v25  ;;  %v215_v13 = vsub.f32 0.0, %v86_v18  ;;  %v1357_v60 = vmin.f32 %v330_v19, 255.0  ;;  %v1635_v63 = vand.u32 2147483648, %v1077_v45 }
  0xe5   :  { %v780_v33 = vor.u32 %v779_v46, %v778_v51  ;;  %v1604_v9 = vmax.f32 %v1326_v16, 1e-08  ;;  %v1636_v1 = vmax.f32 %v1049_v5, 1e-08  ;;  %v214_v54 = vsub.f32 0.0, %v85_v53  ;;  %v809_v51 = vpop.eup %808  ;;  %v99_v53 = vpop.xlane.xlu0 %98 }
  0xe6   :  { %v652_v10 = vor.u32 %v1635_v63, %v650_v59  ;;  %v1368_v25 = vsub.f32 0.0, %v84_v0  ;;  %v320_v23 = vadd.f32 %v773_v17, %v1306_v58  ;;  %v585_v18 = vcvt.s32.f32 %v584_v15  ;;  %v102_v59 = vpop.xlane.xlu1 %101 }
  0xe7   :  { %v1364_v41 = vmul.f32 %v363_v38, %v1636_v1  ;;  %v713_v19 = vcvt.s32.f32 %v712_v28  ;;  %v1371_v61 = vsub.f32 0.0, %v83_v3  ;;  %812 = vrcp.f32 %v1605_v39 }
  0xe8   :  { %v576_v5 = vcvt.f32.s32 %v1350_v40  ;;  %v704_v26 = vcvt.f32.s32 %v1353_v48  ;;  %vm1377_vm1 = vcmp.lt.f32.partialorder %v774_v57, 8388608.0  ;;  %v392_v0 = vpack.c.bf16 %v383_v55, %v382_v2 }
  0xe9   :  { %v362_v8 = vsub.f32 %v1357_v60, %v1276_v12  ;;  %v1386_v3 = vsel %vm1316_vm15, %v652_v10, %v1077_v45  ;;  %v781_v35 = vsel %vm1377_vm1, %v780_v33, %v1091_v62  ;;  %814 = vrcp.f32 %v1604_v9  ;;  %v811_v21 = vpop.eup %810 }
  0xea   :  { %v336_v57 = vmax.f32 %v320_v23, 0.0  ;;  %v82_v38 = vmin.f32 %v1328_v49, 0.0  ;;  %v81_v55 = vmin.f32 %v1341_v24, 0.0  ;;  %v146_v2 = vmax.f32 %v102_v59, 0.0 }
  0xeb   :  { %v586_v15 = vand.u32 2147483647, %v585_v18  ;;  %v714_v17 = vand.u32 2147483647, %v713_v19  ;;  %v1395_v46 = vmul.f32 %v809_v51, %v215_v13  ;;  %v145_v45 = vmax.f32 %v99_v53, 0.0 }
  0xec   :  { %v577_v34 = vcvt.s32.f32 %v576_v5  ;;  %v705_v28 = vcvt.s32.f32 %v704_v26  ;;  %v321_v63 = vadd.f32 %v781_v35, %v1386_v3  ;;  %v1399_v62 = vsel %vm32_vm0, %v392_v0, 0 }
  0xed   :  { %v582_v10 = vand.u32 2147483647, %v1321_v6  ;;  %v587_v33 = vand.u32 2147483648, %v1321_v6  ;;  %v715_v1 = vand.u32 2147483648, %v1324_v50  ;;  %v1405_v23 = vmul.f32 %v809_v51, %v960_v30 }
  0xee   :  { %v710_v13 = vand.u32 2147483647, %v1324_v50  ;;  %v1408_v18 = vmul.f32 %v811_v21, %v214_v54  ;;  %v352_v19 = vmin.f32 %v336_v57, 255.0  ;;  %v162_v59 = vsub.f32 %v146_v2, %v82_v38 }
  0xef   :  { %v588_v5 = vor.u32 %v587_v33, %v586_v15  ;;  %v716_v26 = vor.u32 %v715_v1, %v714_v17  ;;  %v568_v47 = vcvt.f32.s32 %v1395_v46  ;;  %v1414_v0 = vmul.f32 %v811_v21, %v965_v31 }
  0xf0   :  { %v578_v53 = vand.u32 2147483647, %v577_v34  ;;  %v706_v35 = vand.u32 2147483647, %v705_v28  ;;  %v337_v9 = vmax.f32 %v321_v63, 0.0  ;;  %v1418_v30 = vsub.f32 %v145_v45, %v81_v55 }
  0xf1   :  { %vm583_vm2 = vcmp.lt.f32.partialorder %v582_v10, 8388608.0  ;;  %v574_v54 = vand.u32 2147483647, %v1350_v40  ;;  %v702_v51 = vand.u32 2147483647, %v1353_v48  ;;  %v696_v57 = vcvt.f32.s32 %v1405_v23 }
  0xf2   :  { %vm1423_vm3 = vcmp.lt.f32.partialorder %v710_v13, 8388608.0  ;;  %v579_v31 = vand.u32 2147483648, %v1350_v40  ;;  %v707_v21 = vand.u32 2147483648, %v1353_v48  ;;  %v560_v15 = vcvt.f32.s32 %v1408_v18 }
  0xf3   :  { %v1431_v17 = vsel %vm583_vm2, %v588_v5, %v1321_v6  ;;  %v717_v45 = vsel %vm1423_vm3, %v716_v26, %v1324_v50  ;;  %v569_v34 = vcvt.s32.f32 %v568_v47  ;;  %v688_v28 = vcvt.f32.s32 %v1414_v0 }
  0xf4   :  { %v813_v63 = vpop.eup %812  ;;  %v580_v10 = vor.u32 %v579_v31, %v578_v53  ;;  %v708_v33 = vor.u32 %v707_v21, %v706_v35  ;;  %v353_v1 = vmin.f32 %v337_v9, 255.0  ;;  %v368_v13 = vsub.f32 %v352_v19, %v1306_v58 }
  0xf5   :  { %vm575_vm4 = vcmp.lt.f32.partialorder %v574_v54, 8388608.0  ;;  %vm1438_vm5 = vcmp.lt.f32.partialorder %v702_v51, 8388608.0  ;;  %v566_v6 = vand.u32 2147483647, %v1395_v46  ;;  %v697_v5 = vcvt.s32.f32 %v696_v57 }
  0xf6   :  { %v815_v20 = vpop.eup %814  ;;  %v313_v50 = vadd.f32 %v717_v45, %v1431_v17  ;;  %v561_v26 = vcvt.s32.f32 %v560_v15  ;;  %v689_v47 = vcvt.s32.f32 %v688_v28  ;;  %v369_v2 = vsub.f32 %v353_v1, %v1386_v3 }
  0xf7   :  { %v570_v53 = vand.u32 2147483647, %v569_v34  ;;  %v571_v9 = vand.u32 2147483648, %v1395_v46  ;;  %v1447_v58 = vmul.f32 %v813_v63, %v1368_v25  ;;  %v1450_v19 = vmul.f32 %v813_v63, %v978_v36 }
  0xf8   :  { %v1453_v35 = vsel %vm575_vm4, %v580_v10, %v1350_v40  ;;  %v709_v54 = vsel %vm1438_vm5, %v708_v33, %v1353_v48  ;;  %v1643_v51 = vmax.f32 %v1014_v56, 1e-08  ;;  %v1644_v3 = vmax.f32 %v1022_v11, 1e-08 }
  0xf9   :  { %v694_v21 = vand.u32 2147483647, %v1405_v23  ;;  %v698_v25 = vand.u32 2147483647, %v697_v5  ;;  %v699_v15 = vand.u32 2147483648, %v1405_v23  ;;  %v1465_v36 = vmul.f32 %v815_v20, %v1371_v61 }
  0xfa   :  { %v384_v57 = vmul.f32 %v368_v13, %v1643_v51  ;;  %v385_v31 = vmul.f32 %v369_v2, %v1644_v3  ;;  %v329_v40 = vmax.f32 %v313_v50, 0.0  ;;  %v562_v45 = vand.u32 2147483647, %v561_v26 }
  0xfb   :  { %v690_v34 = vand.u32 2147483647, %v689_v47  ;;  %v312_v39 = vadd.f32 %v709_v54, %v1453_v35  ;;  %v572_v48 = vor.u32 %v571_v9, %v570_v53  ;;  %v552_v56 = vcvt.f32.s32 %v1447_v58 }
  0xfc   :  { %v393_v28 = vpack.c.bf16 %v385_v31, %v384_v57  ;;  %v680_v11 = vcvt.f32.s32 %v1450_v19  ;;  %v558_v63 = vand.u32 2147483647, %v1408_v18  ;;  %v563_v10 = vand.u32 2147483648, %v1408_v18 }
  0xfd   :  { %v691_v33 = vand.u32 2147483648, %v1414_v0  ;;  %v700_v1 = vor.u32 %v699_v15, %v698_v25  ;;  %v686_v13 = vand.u32 2147483647, %v1414_v0  ;;  %v544_v5 = vcvt.f32.s32 %v1465_v36 }
  0xfe   :  { %v433_v61 = vsel %vm32_vm0, %v393_v28, 0  ;;  %v1476_v50 = vmul.f32 0.003921569, %v162_v59  ;;  %vm567_vm6 = vcmp.lt.f32.partialorder %v566_v6, 8388608.0  ;;  %v564_v26 = vor.u32 %v563_v10, %v562_v45 }
  0xff   :  { %507 = vmatpush3.bf16.xpose.msra.mxu0 %v433_v61  ;;  %v692_v47 = vor.u32 %v691_v33, %v690_v34  ;;  %v1479_v2 = vmul.f32 %v815_v20, %v983_v37  ;;  %v1645_v53 = vmov 0.0   ;;  %v328_v9 = vmax.f32 %v312_v39, 0.0 }
 0x100   :  { %508 = vmatprep.subr.bf16.mxu0 %v1645_v53  ;;  %vm1482_vm7 = vcmp.lt.f32.partialorder %v694_v21, 8388608.0  ;;  %v553_v51 = vcvt.s32.f32 %v552_v56  ;;  %v681_v57 = vcvt.s32.f32 %v680_v11  ;;  %v345_v3 = vmin.f32 %v329_v40, 255.0 }
 0x101   :  { %v1487_v31 = vsel %vm567_vm6, %v572_v48, %v1395_v46  ;;  %vm559_vm8 = vcmp.lt.f32.partialorder %v558_v63, 8388608.0  ;;  %v672_v59 = vcvt.f32.s32 %v1479_v2  ;;  %v701_v37 = vsel %vm1482_vm7, %v700_v1, %v1405_v23 }
 0x102   :  { %vm687_vm9 = vcmp.lt.f32.partialorder %v686_v13, 8388608.0  ;;  %v545_v20 = vcvt.s32.f32 %v544_v5  ;;  %v195_v6 = vmax.f32 %v1476_v50, 1e-08  ;;  %v1495_v21 = vsel %vm559_vm8, %v564_v26, %v1408_v18  ;;  %v494_v50 = vld [vmem:[%s1588_s2] ss:$0 sm:$0xff] }
 0x103   :  { %v693_v25 = vsel %vm687_vm9, %v692_v47, %v1414_v0  ;;  %v673_v15 = vcvt.s32.f32 %v672_v59  ;;  %v1499_v46 = vmul.f32 0.003921569, %v1418_v30  ;;  %v344_v40 = vmin.f32 %v328_v9, 255.0 }
 0x104   :  { %v554_v45 = vand.u32 2147483647, %v553_v51  ;;  %v682_v34 = vand.u32 2147483647, %v681_v57  ;;  %816 = vrcp.f32 %v195_v6  ;;  %v311_v23 = vadd.f32 %v701_v37, %v1487_v31 }
 0x105   :  { %v550_v28 = vand.u32 2147483647, %v1447_v58  ;;  %v555_v39 = vand.u32 2147483648, %v1447_v58  ;;  %v194_v18 = vmax.f32 %v1499_v46, 1e-08  ;;  %v310_v0 = vadd.f32 %v693_v25, %v1495_v21 }
 0x106   :  { %v683_v48 = vand.u32 2147483648, %v1450_v19  ;;  %v546_v30 = vand.u32 2147483647, %v545_v20  ;;  %v674_v56 = vand.u32 2147483647, %v673_v15  ;;  %v547_v63 = vand.u32 2147483648, %v1465_v36 }
 0x107   :  { %509 = vmatpush3.bf16.xpose.msra.mxu0 %v1399_v62  ;;  %v678_v11 = vand.u32 2147483647, %v1450_v19  ;;  %818 = vrcp.f32 %v194_v18  ;;  %v391_v10 = vpack.c.bf16 %v1334_v7, %v1338_v27  ;;  %v556_v33 = vor.u32 %v555_v39, %v554_v45 }
 0x108   :  { %510 = vmatprep.subr.bf16.mxu0 %v1645_v53  ;;  %v684_v61 = vor.u32 %v683_v48, %v682_v34  ;;  %v675_v1 = vand.u32 2147483648, %v1479_v2  ;;  %v1648_v13 = vmax.f32 %v1051_v52, 1e-08  ;;  %v361_v5 = vsub.f32 %v345_v3, %v1431_v17 }
 0x109   :  { %v542_v26 = vand.u32 2147483647, %v1465_v36  ;;  %v670_v47 = vand.u32 2147483647, %v1479_v2  ;;  %vm843_vm10 = vmmov 0   ;;  %v327_v7 = vmax.f32 %v311_v23, 0.0 }
 0x10a   :  { %v378_v62 = vmul.f32 %v362_v8, %v1648_v13  ;;  %522 = vmatprep.mubr.msk.bf16.mxu0 %vm843_vm10, %v1645_v53  ;;  %v326_v27 = vmax.f32 %v310_v0, 0.0  ;;  %v548_v9 = vor.u32 %v547_v63, %v546_v30  ;;  %v676_v54 = vor.u32 %v675_v1, %v674_v56 }
 0x10b   :  { %v360_v51 = vsub.f32 %v344_v40, %v1453_v35  ;;  %vm551_vm11 = vcmp.lt.f32.partialorder %v550_v28, 8388608.0  ;;  %vm679_vm12 = vcmp.lt.f32.partialorder %v678_v11, 8388608.0  ;;  %v427_v52 = vsel %vm32_vm0, %v391_v10, 0 }
 0x10c   :  { %v1530_v12 = vsel %vm551_vm11, %v556_v33, %v1447_v58  ;;  %v685_v60 = vsel %vm679_vm12, %v684_v61, %v1450_v19  ;;  %vm543_vm13 = vcmp.lt.f32.partialorder %v542_v26, 8388608.0  ;;  %vm671_vm14 = vcmp.lt.f32.partialorder %v670_v47, 8388608.0 }
 0x10d   :  { %v343_v8 = vmin.f32 %v327_v7, 255.0  ;;  %v342_v17 = vmin.f32 %v326_v27, 255.0  ;;  %v1534_v57 = vsel %vm543_vm13, %v548_v9, %v1465_v36  ;;  %v677_v3 = vsel %vm671_vm14, %v676_v54, %v1479_v2 }
 0x10e   :  { %v1649_v35 = vmax.f32 %v1218_v4, 1e-08  ;;  %v1650_v37 = vmax.f32 %v1231_v14, 1e-08  ;;  %v309_v58 = vadd.f32 %v685_v60, %v1530_v12  ;;  %v390_v19 = vpack.c.bf16 %v1364_v41, %v378_v62 }
 0x10f   :  { %511 = vmatpush3.bf16.xpose.msra.mxu0 %v427_v52  ;;  %v211_v25 = vsub.f32 0.0, %v82_v38  ;;  %v308_v15 = vadd.f32 %v677_v3, %v1534_v57  ;;  %v359_v2 = vsub.f32 %v343_v8, %v1487_v31  ;;  %v358_v4 = vsub.f32 %v342_v17, %v1495_v21 }
 0x110   :  { %v377_v59 = vmul.f32 %v361_v5, %v1649_v35  ;;  %v376_v20 = vmul.f32 %v360_v51, %v1650_v37  ;;  %512 = vmatprep.subr.bf16.mxu0 %v1645_v53  ;;  %v325_v45 = vmax.f32 %v309_v58, 0.0  ;;  %v210_v34 = vsub.f32 0.0, %v81_v55 }
 0x111   :  { %v817_v36 = vpop.eup %816  ;;  %v424_v23 = vsel %vm32_vm0, %v390_v19, 0  ;;  %v324_v38 = vmax.f32 %v308_v15, 0.0  ;;  %v375_v31 = vmul.f32 %v359_v2, %v199_v32  ;;  %v1651_v21 = vmax.f32 %v1263_v29, 1e-08 }
 0x112   :  { %v229_v40 = vmul.f32 %v817_v36, %v211_v25  ;;  %v275_v14 = vmul.f32 %v817_v36, %v996_v42  ;;  %v389_v41 = vpack.c.bf16 %v377_v59, %v376_v20  ;;  %v341_v24 = vmin.f32 %v325_v45, 255.0 }
 0x113   :  { %v374_v42 = vmul.f32 %v358_v4, %v1651_v21  ;;  %v340_v1 = vmin.f32 %v324_v38, 255.0  ;;  %v1652_v36 = vmax.f32 %v1308_v44, 1e-08  ;;  %v1653_v2 = vmax.f32 %v1326_v16, 1e-08 }
 0x114   :  { %v819_v28 = vpop.eup %818  ;;  %v536_v49 = vcvt.f32.s32 %v229_v40  ;;  %v664_v39 = vcvt.f32.s32 %v275_v14  ;;  %v534_v30 = vand.u32 2147483647, %v229_v40  ;;  %v421_v63 = vsel %vm32_vm0, %v389_v41, 0 }
 0x115   :  { %v227_v0 = vmul.f32 %v819_v28, %v210_v34  ;;  %v274_v48 = vmul.f32 %v819_v28, %v1001_v43  ;;  %v539_v33 = vand.u32 2147483648, %v229_v40  ;;  %v662_v61 = vand.u32 2147483647, %v275_v14 }
 0x116   :  { %v537_v56 = vcvt.s32.f32 %v536_v49  ;;  %v665_v55 = vcvt.s32.f32 %v664_v39  ;;  %v667_v32 = vand.u32 2147483648, %v275_v14  ;;  %vm535_vm15 = vcmp.lt.f32.partialorder %v534_v30, 8388608.0  ;;  %v787_v49 = vld [vmem:[%s1586_s0] sm:$0xff]  }
 0x117   :  { %513 = vmatpush3.bf16.xpose.msra.mxu0 %v424_v23  ;;  %v528_v11 = vcvt.f32.s32 %v227_v0  ;;  %v656_v43 = vcvt.f32.s32 %v274_v48  ;;  %v526_v62 = vand.u32 2147483647, %v227_v0  ;;  %v531_v7 = vand.u32 2147483648, %v227_v0 }
 0x118   :  { %514 = vmatprep.subr.bf16.mxu0 %v1645_v53  ;;  %v538_v10 = vand.u32 2147483647, %v537_v56  ;;  %v666_v22 = vand.u32 2147483647, %v665_v55  ;;  %v654_v27 = vand.u32 2147483647, %v274_v48  ;;  %v388_v3 = vpack.c.bf16 %v375_v31, %v374_v42 }
 0x119   :  { %v529_v13 = vcvt.s32.f32 %v528_v11  ;;  %v657_v5 = vcvt.s32.f32 %v656_v43  ;;  %vm663_vm1 = vcmp.lt.f32.partialorder %v662_v61, 8388608.0  ;;  %v659_v51 = vand.u32 2147483648, %v274_v48 }
 0x11a   :  { %v540_v29 = vor.u32 %v539_v33, %v538_v10  ;;  %v668_v26 = vor.u32 %v667_v32, %v666_v22  ;;  %vm527_vm2 = vcmp.lt.f32.partialorder %v526_v62, 8388608.0  ;;  %v357_v35 = vsub.f32 %v341_v24, %v1530_v12 }
 0x11b   :  { %v530_v47 = vand.u32 2147483647, %v529_v13  ;;  %v658_v54 = vand.u32 2147483647, %v657_v5  ;;  %v356_v59 = vsub.f32 %v340_v1, %v1534_v57  ;;  %vm655_vm3 = vcmp.lt.f32.partialorder %v654_v27, 8388608.0 }
 0x11c   :  { %v541_v9 = vsel %vm535_vm15, %v540_v29, %v229_v40  ;;  %v669_v52 = vsel %vm663_vm1, %v668_v26, %v275_v14  ;;  %v418_v25 = vsel %vm32_vm0, %v388_v3, 0  ;;  %v373_v15 = vmul.f32 %v357_v35, %v1652_v36 }
 0x11d   :  { %v532_v60 = vor.u32 %v531_v7, %v530_v47  ;;  %v307_v8 = vadd.f32 %v669_v52, %v541_v9  ;;  %v660_v17 = vor.u32 %v659_v51, %v658_v54  ;;  %v372_v4 = vmul.f32 %v356_v59, %v1653_v2 }
 0x11f   :  { %515 = vmatpush3.bf16.xpose.msra.mxu0 %v421_v63  ;;  %v533_v37 = vsel %vm527_vm2, %v532_v60, %v227_v0  ;;  %v323_v20 = vmax.f32 %v307_v8, 0.0  ;;  %v661_v58 = vsel %vm655_vm3, %v660_v17, %v274_v48  ;;  %v387_v34 = vpack.c.bf16 %v373_v15, %v372_v4 }
 0x120   :  { %516 = vmatprep.subr.bf16.mxu0 %v1645_v53  ;;  %v306_v19 = vadd.f32 %v661_v58, %v533_v37 }
 0x121   :  { %v339_v40 = vmin.f32 %v323_v20, 255.0  ;;  %v415_v44 = vsel %vm32_vm0, %v387_v34, 0 }
 0x122   :  { %v322_v14 = vmax.f32 %v306_v19, 0.0 }
 0x123   :  { %v355_v57 = vsub.f32 %v339_v40, %v541_v9 }
 0x124   :  { %v338_v12 = vmin.f32 %v322_v14, 255.0 }
 0x125   :  { %v371_v23 = vmul.f32 %v355_v57, %v195_v6 }
 0x126   :  { %v354_v45 = vsub.f32 %v338_v12, %v533_v37 }
 0x127   :  { %517 = vmatpush3.bf16.xpose.msra.mxu0 %v418_v25 }
 0x128   :  { %518 = vmatprep.subr.bf16.mxu0 %v1645_v53  ;;  %v370_v41 = vmul.f32 %v354_v45, %v194_v18 }
 0x12a   :  { %v386_v16 = vpack.c.bf16 %v371_v23, %v370_v41 }
 0x12c   :  { %v412_v28 = vsel %vm32_vm0, %v386_v16, 0 }
 0x12f   :  { %519 = vmatpush3.bf16.xpose.msra.mxu0 %v415_v44 }
 0x130   :  { %520 = vmatprep.subr.bf16.mxu0 %v1645_v53 }
 0x137   :  { %521 = vmatpush3.bf16.xpose.msra.mxu0 %v412_v28 }
 0x13e   :  { %523 = vmatmul.mubr.msk.bf16.vlgmr.msra.gmra.mxu0 %vm32_vm0, %v787_v49 }
 0x1fe   :  { %v469_v6 = vpop.f32.mrf.mxu0 }
 0x1ff   :  { %v470_v46 = vadd.f32 %v494_v50, %v469_v6 }
 0x200   :  { %v524_v18 = vpop.f32.mrf.mxu0 }
 0x201   :  { %476 = vst [vmem:[#allocation2] sm:$0xff] %v470_v46 }
 0x202   :  { %v472_v53 = vpop.f32.mrf.mxu0 }
 0x203   :  { %v473_v38 = vadd.f32 %v494_v50, %v472_v53 }
 0x204   :  { %v525_v39 = vpop.f32.mrf.mxu0 }
 0x205   :  { %477 = vst [vmem:[#allocation2 + $0x8] sm:$0xff] %v473_v38 }
 0x206   :  { %831 = shalt.err (!%p828_p4)
}
 0x207   :  { %s845_s0 = smov 128   ;;  %s846_s2 = smov 8  }
 0x208   :  { %489 = dma.vmem_to_hbm [thread:$0]  %s484_s21, 256, %s1589_s3, [#allocation3], %s845_s0, %s845_s0, %s846_s2  }
 0x209   :  { %840 = dma.done.wait [#allocation3], 256  }
 0x20a   :  { %841 = vsyncadd [#allocation3], 4294967040 }
 0x20b   :  { %493 = vsyncpa [#allocation3], 1 }

</bundles_post_ra>
